<compile_context>
chip_gen: v7x
topology: tpu7x:2x2x1
jax: 0.10.0
libtpu: 0.0.40
codegen_flags: <defaults>
</compile_context>

<pallas_src>
import math

import jax
import jax.numpy as jnp
from jax.experimental import pallas as pl
from jax.experimental.pallas import tpu as pltpu


# --------------------------------------------------------------------------
# Kernel 1: k projection  n_k = k @ Wk + bk   (tiled over Nk, fully parallel)
# --------------------------------------------------------------------------
def kproj_kernel(k_ref, wk_ref, bk_ref, nk_ref):
    nk_ref[...] = (
        jnp.dot(
            k_ref[...].astype(jnp.bfloat16),
            wk_ref[...].astype(jnp.bfloat16),
            preferred_element_type=jnp.float32,
        )
        + bk_ref[...]
    )


def project_k(k, wk, bk, *, tk=512):
    """k: [Nk, Dk], wk: [Dk, H], bk: [1, H] -> n_k: [Nk, H] float32."""
    nk_rows, d_k = k.shape
    hid = wk.shape[1]

    tk = max(8, min(tk, (nk_rows + 7) // 8 * 8))
    tk = (tk + 7) // 8 * 8
    grid_k = pl.cdiv(nk_rows, tk)
    nk_pad = grid_k * tk
    if nk_pad != nk_rows:
        k = jnp.pad(k, ((0, nk_pad - nk_rows), (0, 0)))

    nk = pl.pallas_call(
        kproj_kernel,
        out_shape=jax.ShapeDtypeStruct((nk_pad, hid), jnp.float32),
        grid_spec=pltpu.PrefetchScalarGridSpec(
            num_scalar_prefetch=0,
            grid=(grid_k,),
            in_specs=[
                pl.BlockSpec((tk, d_k), lambda i: (i, 0)),   # k: tiled over Nk
                pl.BlockSpec((d_k, hid), lambda i: (0, 0)),  # Wk: resident
                pl.BlockSpec((1, hid), lambda i: (0, 0)),    # bk: resident
            ],
            out_specs=pl.BlockSpec((tk, hid), lambda i: (i, 0)),
        ),
        compiler_params=pltpu.CompilerParams(dimension_semantics=("parallel",)),
    )(k, wk, bk)
    # Slice padding off: padded rows (== bk) must NOT participate in the softmax.
    return nk[:nk_rows]


# --------------------------------------------------------------------------
# Kernel 2: attention over a q tile, with the full (precomputed) n_k resident.
# --------------------------------------------------------------------------
def attention_kernel(q_ref, wq_ref, bq_ref, nk_ref, out_ref):
    # n_q = (q @ Wq + bq) * 1/sqrt(300); scale folded into the small [tq, H] tile.
    scale = 1.0 / math.sqrt(300.0)
    n_q = (
        jnp.dot(
            q_ref[...].astype(jnp.bfloat16),
            wq_ref[...].astype(jnp.bfloat16),
            preferred_element_type=jnp.float32,
        )
        + bq_ref[...]
    ) * scale

    n_k_b = nk_ref[...].astype(jnp.bfloat16)

    # qk = n_q @ n_k.T via RHS-contracted dot_general (no transpose), bf16 -> f32 acc.
    qk = jax.lax.dot_general(
        n_q.astype(jnp.bfloat16),
        n_k_b,
        dimension_numbers=(((1,), (1,)), ((), ())),
        preferred_element_type=jnp.float32,
    )

    # Numerically-stable softmax over the Nk axis (dim=1 in the module), kept f32.
    m = jnp.max(qk, axis=1, keepdims=True)
    e = jnp.exp(qk - m)
    denom = jnp.sum(e, axis=1, keepdims=True)

    # PV matmul on the UNNORMALIZED numerator, normalize afterwards ([tq, H] mul).
    pv = jnp.dot(e.astype(jnp.bfloat16), n_k_b, preferred_element_type=jnp.float32)
    out_ref[...] = (pv * pl.reciprocal(denom, approx=False)).astype(out_ref.dtype)


def _vmem_limit_bytes(tq, nk_rows, d_q, hid):
    f32 = 4
    # Double-buffered pipelined/resident I/O tiles.
    io = 2 * (tq * d_q + d_q * hid + hid + nk_rows * hid + tq * hid) * f32
    # [tq, Nk] f32 + bf16 intermediates, plus a few [tq, H] f32 temporaries.
    inter = tq * nk_rows * (2 * f32 + 2 * 2) + 4 * tq * hid * f32
    est = io + inter
    return int(min(max(2 * est + (8 << 20), 32 << 20), 64 << 20))


def attention(q, k, wq, bq, wk, bk, *, tq=256):
    """q: [Nq, Dq], k: [Nk, Dk], wq: [Dq, H], bq: [1, H], wk: [Dk, H], bk: [1, H].

    Weights are stored pre-transposed ([in_dim, hid_dim]) so kernels do x @ W + b.
    Returns [Nq, H] float32.
    """
    n_q_rows, d_q = q.shape
    n_k_rows, _ = k.shape
    hid = wq.shape[1]

    # Hoist the k projection out of the Nq grid -> main grid is fully parallel.
    n_k = project_k(k, wk, bk)

    # Tile the Nq axis (multiple of 8 sublanes); pad Nq and slice the result.
    tq = max(8, min(tq, (n_q_rows + 7) // 8 * 8))
    tq = (tq + 7) // 8 * 8
    grid_q = pl.cdiv(n_q_rows, tq)
    n_q_pad = grid_q * tq
    if n_q_pad != n_q_rows:
        q = jnp.pad(q, ((0, n_q_pad - n_q_rows), (0, 0)))

    out = pl.pallas_call(
        attention_kernel,
        out_shape=jax.ShapeDtypeStruct((n_q_pad, hid), jnp.float32),
        grid_spec=pltpu.PrefetchScalarGridSpec(
            num_scalar_prefetch=0,
            grid=(grid_q,),
            in_specs=[
                pl.BlockSpec((tq, d_q), lambda i: (i, 0)),        # q: tiled over Nq
                pl.BlockSpec((d_q, hid), lambda i: (0, 0)),       # Wq: resident
                pl.BlockSpec((1, hid), lambda i: (0, 0)),         # bq: resident
                pl.BlockSpec((n_k_rows, hid), lambda i: (0, 0)),  # n_k: resident
            ],
            out_specs=pl.BlockSpec((tq, hid), lambda i: (i, 0)),
        ),
        compiler_params=pltpu.CompilerParams(
            # q tiles are independent now that n_k is precomputed -> megacore OK.
            dimension_semantics=("parallel",),
            vmem_limit_bytes=_vmem_limit_bytes(tq, n_k_rows, d_q, hid),
        ),
    )(q, wq, bq, n_k)
    return out[:n_q_rows]


def attention_ref(q, k, wq, bq, wk, bk):
    n_q = q @ wq + bq
    n_k = k @ wk + bk
    qk = (n_q @ n_k.T) / math.sqrt(300.0)
    s = jax.nn.softmax(qk, axis=1)
    return s @ n_k


if __name__ == "__main__":
    # Small but lane-dense shapes (feature dims = 128) so MXU passes / stores are
    # not mostly masked padding; Nq equal to tq exercises the pipelined grid path.
    Nq, Nk = 256, 256
    q_in_dim, kv_in_dim, hid_dim = 128, 128, 128

    key = jax.random.PRNGKey(0)
    kq, kk, kwq, kbq, kwk, kbk = jax.random.split(key, 6)

    q = jax.random.normal(kq, (Nq, q_in_dim), dtype=jnp.float32)
    k = jax.random.normal(kk, (Nk, kv_in_dim), dtype=jnp.float32)

    # Synthetic nn.Linear parameters, stored transposed as [in_dim, hid_dim].
    wq = jax.random.normal(kwq, (q_in_dim, hid_dim), dtype=jnp.float32) * 0.05
    bq = jax.random.normal(kbq, (1, hid_dim), dtype=jnp.float32) * 0.05
    wk = jax.random.normal(kwk, (kv_in_dim, hid_dim), dtype=jnp.float32) * 0.05
    bk = jax.random.normal(kbk, (1, hid_dim), dtype=jnp.float32) * 0.05

    out = attention(q, k, wq, bq, wk, bk, tq=256)
    out = jax.block_until_ready(out)

    ref = attention_ref(q, k, wq, bq, wk, bk)
    assert out.shape == (Nq, hid_dim)
    # bf16 MXU operand feed (f32 accumulation) -> ~1e-2-level relative error budget.
    assert jnp.allclose(out, ref, atol=2e-2, rtol=2e-2), float(
        jnp.max(jnp.abs(out - ref))
    )

    print("KERNEL_OK")
</pallas_src>

<mosaic_0001>
module attributes {stable_mosaic.version = 11 : i64} {
  func.func @kproj_kernel(%arg0: i32, %arg1: memref<256x128xf32, #tpu.memory_space<vmem>>, %arg2: memref<128x128xf32, #tpu.memory_space<vmem>>, %arg3: memref<1x128xf32, #tpu.memory_space<vmem>>, %arg4: memref<256x128xf32, #tpu.memory_space<vmem>>) attributes {dimension_semantics = [#tpu.dimension_semantics<parallel>], iteration_bounds = array<i64: 1>, scalar_prefetch = 0 : i64, scratch_operands = 0 : i64, tpu.core_type = #tpu.core_type<tc>, window_params = [{transform_indices = @transform_0, window_bounds = array<i64: 256, 128>}, {pipeline_mode = #tpu.pipeline_mode<synchronous>, transform_indices = @transform_1, window_bounds = array<i64: 128, 128>}, {pipeline_mode = #tpu.pipeline_mode<synchronous>, transform_indices = @transform_2, window_bounds = array<i64: 1, 128>}, {transform_indices = @transform_3, window_bounds = array<i64: 256, 128>}]} {
    %c0 = arith.constant 0 : index
    %c0_0 = arith.constant 0 : index
    %0 = vector.load %arg1[%c0, %c0_0] : memref<256x128xf32, #tpu.memory_space<vmem>>, vector<256x128xf32>
    %1 = arith.truncf %0 : vector<256x128xf32> to vector<256x128xbf16>
    %c0_1 = arith.constant 0 : index
    %c0_2 = arith.constant 0 : index
    %2 = vector.load %arg2[%c0_1, %c0_2] : memref<128x128xf32, #tpu.memory_space<vmem>>, vector<128x128xf32>
    %3 = arith.truncf %2 : vector<128x128xf32> to vector<128x128xbf16>
    %cst = arith.constant dense<0.000000e+00> : vector<256x128xf32>
    %4 = tpu.matmul %1, %3, %cst {dimension_numbers = #tpu.dot_dimension_numbers<[1], [0], [0], [1], [0, 0, 1, 1], [], []>} : vector<256x128xbf16>, vector<128x128xbf16>, vector<256x128xf32> -> vector<256x128xf32>
    %c0_3 = arith.constant 0 : index
    %c0_4 = arith.constant 0 : index
    %5 = vector.load %arg3[%c0_3, %c0_4] : memref<1x128xf32, #tpu.memory_space<vmem>>, vector<1x128xf32>
    %6 = vector.broadcast %5 : vector<1x128xf32> to vector<256x128xf32>
    %7 = arith.addf %4, %6 : vector<256x128xf32>
    %c0_5 = arith.constant 0 : index
    %c0_6 = arith.constant 0 : index
    %8 = vector.load %arg4[%c0_5, %c0_6] : memref<256x128xf32, #tpu.memory_space<vmem>>, vector<256x128xf32>
    tpu.vector_store %arg4[%c0_5, %c0_6], %7 {strides = array<i32>} : memref<256x128xf32, #tpu.memory_space<vmem>>, vector<256x128xf32>,
    return
  }
  func.func @transform_0(%arg0: i32) -> (i32, i32) {
    %c0_i32 = arith.constant 0 : i32
    %c0_i32_0 = arith.constant 0 : i32
    return %arg0, %c0_i32 : i32, i32
  }
  func.func @transform_1(%arg0: i32) -> (i32, i32) {
    %c0_i32 = arith.constant 0 : i32
    %c0_i32_0 = arith.constant 0 : i32
    %c0_i32_1 = arith.constant 0 : i32
    return %c0_i32, %c0_i32_0 : i32, i32
  }
  func.func @transform_2(%arg0: i32) -> (i32, i32) {
    %c0_i32 = arith.constant 0 : i32
    %c0_i32_0 = arith.constant 0 : i32
    %c0_i32_1 = arith.constant 0 : i32
    return %c0_i32, %c0_i32_0 : i32, i32
  }
  func.func @transform_3(%arg0: i32) -> (i32, i32) {
    %c0_i32 = arith.constant 0 : i32
    %c0_i32_0 = arith.constant 0 : i32
    return %arg0, %c0_i32 : i32, i32
  }
}

</mosaic_0001>

<bundles_post_ra>
// kernel: tpu_custom_call.1
= control target key start
LH: loop header
LB: loop body
LE: loop exit
PB: predicated region body
PF: predicated region fallthrough
CT: control target
= control target key end

     0   :  { %8 = vsyncpa [#allocation3], 0  ;;  %s607_s0 = inlined_call_operand.hbm [shape: f32[256,128], index: 0, kind: input, shape index: {}]   ;;  %s608_s1 = inlined_call_operand.hbm [shape: f32[128,128], index: 1, kind: input, shape index: {}]   ;;  %s609_s2 = inlined_call_operand.vmem [shape: f32[1,128], index: 2, kind: input, shape index: {}]   ;;  %s610_s3 = inlined_call_operand.hbm [shape: f32[256,128], index: 3, kind: output, shape index: {}]  }
   0x1   :  { %9 = vsyncpa [#allocation6], 0 }
   0x2   :  { %10 = vsyncpa [#allocation4], 0  ;;  %s500_s12 = smov [#allocation2]   ;;  %s428_s16 = scalar_lea.hbm %s607_s0, 4096 }
   0x3   :  { %s16_s13 = sshll.u32 %s500_s12, 4  ;;  %p429_p0 = scmp.ne.s32.totalorder %s607_s0, %s428_s16  ;;  %s17_s13 = int_to_ptr.vmem [resolvable:$true] %s16_s13 }
   0x4   :  { %p432_p1 = scmp.lt.u32.totalorder %s428_s16, %s607_s0 }
   0x6   :  { %p434_p2 = pnand %p432_p1, %p429_p0 }
   0x8   :  { %437 = shalt.err (!%p434_p2)
}
   0x9   :  { %s438_s21 = scalar_lea.vmem %s17_s13, 4096  ;;  %p443_p4 = scmp.lt.s32.totalorder %s17_s13, %s17_s13 }
   0xa   :  { %p439_p3 = scmp.ne.s32.totalorder %s17_s13, %s438_s21  ;;  %p444_p5 = scmp.lt.s32.totalorder %s438_s21, %s438_s21 }
   0xc   :  { %p445_p6 = por %p444_p5, %p443_p4 }
   0xe   :  { %p446_p7 = pnand %p445_p6, %p439_p3 }
  0x10   :  { %449 = shalt.err (!%p446_p7)
}
  0x11   :  { %s501_s22 = smov 128   ;;  %s502_s23 = smov 8  }
  0x12   :  { %22 = dma.hbm_to_vmem [thread:$0]  %s607_s0, 4096, %s17_s13, [#allocation3], %s501_s22, %s501_s22, %s502_s23  }
  0x13   :  { %s503_s26 = smov [#allocation5]   ;;  %s450_s30 = scalar_lea.hbm %s608_s1, 2048 }
  0x14   :  { %s28_s27 = sshll.u32 %s503_s26, 4  ;;  %p451_p8 = scmp.ne.s32.totalorder %s608_s1, %s450_s30  ;;  %s29_s27 = int_to_ptr.vmem [resolvable:$true] %s28_s27 }
  0x15   :  { %p454_p9 = scmp.lt.u32.totalorder %s450_s30, %s608_s1 }
  0x17   :  { %p456_p10 = pnand %p454_p9, %p451_p8 }
  0x19   :  { %459 = shalt.err (!%p456_p10)
}
  0x1a   :  { %s460_s8 = scalar_lea.vmem %s29_s27, 2048  ;;  %p465_p12 = scmp.lt.s32.totalorder %s29_s27, %s29_s27 }
  0x1b   :  { %p461_p11 = scmp.ne.s32.totalorder %s29_s27, %s460_s8  ;;  %p466_p13 = scmp.lt.s32.totalorder %s460_s8, %s460_s8 }
  0x1d   :  { %p467_p0 = por %p466_p13, %p465_p12 }
  0x1f   :  { %p468_p1 = pnand %p467_p0, %p461_p11 }
  0x21   :  { %471 = shalt.err (!%p468_p1)
}
  0x22   :  { %34 = dma.hbm_to_vmem [thread:$0]  %s608_s1, 2048, %s29_s27, [#allocation6], %s501_s22, %s501_s22, %s502_s23  }
  0x23   :  { %494 = dma.done.wait [#allocation3], 4096  }
  0x24   :  { %495 = vsyncadd [#allocation3], 4294963200 }
  0x25   :  { %496 = dma.done.wait [#allocation6], 2048  }
  0x26   :  { %497 = vsyncadd [#allocation6], 4294965248  ;;  %v92_v0 = vld [vmem:[#allocation5] sm:$0xff]  ;;  %v93_v1 = vld [vmem:[#allocation5 + $0x8] sm:$0xff] }
  0x27   :  { %v94_v2 = vld [vmem:[#allocation5 + $0x10] sm:$0xff]  ;;  %v108_v3 = vpack.c.bf16 %v93_v1, %v92_v0  ;;  %v95_v4 = vld [vmem:[#allocation5 + $0x18] sm:$0xff]  ;;  %v96_v6 = vld [vmem:[#allocation5 + $0x20] sm:$0xff] }
  0x28   :  { %v109_v5 = vpack.c.bf16 %v95_v4, %v94_v2  ;;  %v97_v7 = vld [vmem:[#allocation5 + $0x28] sm:$0xff]  ;;  %v98_v9 = vld [vmem:[#allocation5 + $0x30] sm:$0xff]  ;;  %v44_v10 = vld [vmem:[#allocation2] sm:$0xff] }
  0x29   :  { %359 = vmatprep.subr.bf16.mxu0 %v108_v3  ;;  %407 = vmatprep.subr.bf16.mxu1 %v108_v3  ;;  %v110_v8 = vpack.c.bf16 %v97_v7, %v96_v6  ;;  %v45_v11 = vld [vmem:[#allocation2 + $0x8] sm:$0xff]  ;;  %v99_v12 = vld [vmem:[#allocation5 + $0x38] sm:$0xff]  ;;  %v60_v14 = vld [vmem:[#allocation2 + $0x80] sm:$0xff] }
  0x2a   :  { %360 = vmatpush3.bf16.msra.mxu0 %v108_v3  ;;  %415 = vmatpush3.bf16.msra.mxu1 %v108_v3  ;;  %v76_v13 = vpack.c.bf16 %v45_v11, %v44_v10  ;;  %v61_v15 = vld [vmem:[#allocation2 + $0x88] sm:$0xff]  ;;  %v111_v17 = vpack.c.bf16 %v99_v12, %v98_v9  ;;  %v100_v18 = vld [vmem:[#allocation5 + $0x40] sm:$0xff]  ;;  %v102_v21 = vld [vmem:[#allocation5 + $0x50] sm:$0xff] }
  0x2b   :  { %361 = vmatprep.subr.bf16.mxu0 %v109_v5  ;;  %408 = vmatprep.subr.bf16.mxu1 %v109_v5  ;;  %v84_v16 = vpack.c.bf16 %v61_v15, %v60_v14  ;;  %v101_v19 = vld [vmem:[#allocation5 + $0x48] sm:$0xff]  ;;  %v103_v22 = vld [vmem:[#allocation5 + $0x58] sm:$0xff]  ;;  %v104_v24 = vld [vmem:[#allocation5 + $0x60] sm:$0xff] }
  0x2c   :  { %375 = vmatprep.mubr.bf16.mxu0 %v76_v13  ;;  %v112_v20 = vpack.c.bf16 %v101_v19, %v100_v18  ;;  %v113_v23 = vpack.c.bf16 %v103_v22, %v102_v21  ;;  %v105_v25 = vld [vmem:[#allocation5 + $0x68] sm:$0xff]  ;;  %v106_v27 = vld [vmem:[#allocation5 + $0x70] sm:$0xff]  ;;  %v107_v28 = vld [vmem:[#allocation5 + $0x78] sm:$0xff] }
  0x2d   :  { %391 = vmatprep.mubr.bf16.mxu1 %v84_v16  ;;  %v114_v26 = vpack.c.bf16 %v105_v25, %v104_v24  ;;  %v115_v29 = vpack.c.bf16 %v107_v28, %v106_v27  ;;  %v46_v30 = vld [vmem:[#allocation2 + $0x10] sm:$0xff]  ;;  %v47_v31 = vld [vmem:[#allocation2 + $0x18] sm:$0xff]  ;;  %v48_v34 = vld [vmem:[#allocation2 + $0x20] sm:$0xff] }
  0x2e   :  { %362 = vmatpush3.bf16.msra.mxu0 %v109_v5  ;;  %416 = vmatpush3.bf16.msra.mxu1 %v109_v5  ;;  %v62_v32 = vld [vmem:[#allocation2 + $0x90] sm:$0xff]  ;;  %v63_v33 = vld [vmem:[#allocation2 + $0x98] sm:$0xff]  ;;  %v49_v35 = vld [vmem:[#allocation2 + $0x28] sm:$0xff]  ;;  %v77_v38 = vpack.c.bf16 %v47_v31, %v46_v30 }
  0x2f   :  { %363 = vmatprep.subr.bf16.mxu0 %v110_v8  ;;  %409 = vmatprep.subr.bf16.mxu1 %v110_v8  ;;  %v64_v36 = vld [vmem:[#allocation2 + $0xa0] sm:$0xff]  ;;  %v65_v37 = vld [vmem:[#allocation2 + $0xa8] sm:$0xff]  ;;  %v85_v39 = vpack.c.bf16 %v63_v33, %v62_v32  ;;  %v78_v40 = vpack.c.bf16 %v49_v35, %v48_v34  ;;  %v50_v42 = vld [vmem:[#allocation2 + $0x30] sm:$0xff] }
  0x30   :  { %v86_v41 = vpack.c.bf16 %v65_v37, %v64_v36  ;;  %v51_v43 = vld [vmem:[#allocation2 + $0x38] sm:$0xff]  ;;  %v66_v44 = vld [vmem:[#allocation2 + $0xb0] sm:$0xff]  ;;  %v52_v46 = vld [vmem:[#allocation2 + $0x40] sm:$0xff] }
  0x31   :  { %v67_v45 = vld [vmem:[#allocation2 + $0xb8] sm:$0xff]  ;;  %v53_v47 = vld [vmem:[#allocation2 + $0x48] sm:$0xff]  ;;  %v68_v48 = vld [vmem:[#allocation2 + $0xc0] sm:$0xff]  ;;  %v79_v50 = vpack.c.bf16 %v51_v43, %v50_v42 }
  0x32   :  { %364 = vmatpush3.bf16.msra.mxu0 %v110_v8  ;;  %417 = vmatpush3.bf16.msra.mxu1 %v110_v8  ;;  %v69_v49 = vld [vmem:[#allocation2 + $0xc8] sm:$0xff]  ;;  %v87_v51 = vpack.c.bf16 %v67_v45, %v66_v44  ;;  %v80_v52 = vpack.c.bf16 %v53_v47, %v52_v46  ;;  %v54_v54 = vld [vmem:[#allocation2 + $0x50] sm:$0xff]  ;;  %v55_v55 = vld [vmem:[#allocation2 + $0x58] sm:$0xff] }
  0x33   :  { %365 = vmatprep.subr.bf16.mxu0 %v111_v17  ;;  %410 = vmatprep.subr.bf16.mxu1 %v111_v17  ;;  %v88_v53 = vpack.c.bf16 %v69_v49, %v68_v48  ;;  %v70_v56 = vld [vmem:[#allocation2 + $0xd0] sm:$0xff]  ;;  %v71_v57 = vld [vmem:[#allocation2 + $0xd8] sm:$0xff]  ;;  %v56_v58 = vld [vmem:[#allocation2 + $0x60] sm:$0xff]  ;;  %v81_v62 = vpack.c.bf16 %v55_v55, %v54_v54 }
  0x34   :  { %v57_v59 = vld [vmem:[#allocation2 + $0x68] sm:$0xff]  ;;  %v72_v60 = vld [vmem:[#allocation2 + $0xe0] sm:$0xff]  ;;  %v89_v63 = vpack.c.bf16 %v71_v57, %v70_v56  ;;  %v58_v2 = vld [vmem:[#allocation2 + $0x70] sm:$0xff] }
  0x35   :  { %v73_v61 = vld [vmem:[#allocation2 + $0xe8] sm:$0xff]  ;;  %v82_v0 = vpack.c.bf16 %v57_v59, %v56_v58  ;;  %v59_v3 = vld [vmem:[#allocation2 + $0x78] sm:$0xff]  ;;  %v74_v4 = vld [vmem:[#allocation2 + $0xf0] sm:$0xff] }
  0x36   :  { %366 = vmatpush3.bf16.msra.mxu0 %v111_v17  ;;  %418 = vmatpush3.bf16.msra.mxu1 %v111_v17  ;;  %v90_v1 = vpack.c.bf16 %v73_v61, %v72_v60  ;;  %v75_v5 = vld [vmem:[#allocation2 + $0xf8] sm:$0xff]  ;;  %v83_v6 = vpack.c.bf16 %v59_v3, %v58_v2  ;;  %v558_v8 = vld [vmem:[%s609_s2] ss:$0 sm:$0xff]  ;;  %s504_s2 = smov [#allocation7]  }
  0x37   :  { %367 = vmatprep.subr.bf16.mxu0 %v112_v20  ;;  %411 = vmatprep.subr.bf16.mxu1 %v112_v20  ;;  %v91_v7 = vpack.c.bf16 %v75_v5, %v74_v4  ;;  %s321_s11 = sshll.u32 %s504_s2, 4  ;;  %s322_s11 = int_to_ptr.vmem [resolvable:$true] %s321_s11 }
  0x38   :  { %s472_s12 = scalar_lea.vmem %s322_s11, 4096  ;;  %p477_p3 = scmp.lt.s32.totalorder %s322_s11, %s322_s11 }
  0x39   :  { %p473_p2 = scmp.ne.s32.totalorder %s322_s11, %s472_s12  ;;  %p478_p4 = scmp.lt.s32.totalorder %s472_s12, %s472_s12 }
  0x3a   :  { %368 = vmatpush3.bf16.msra.mxu0 %v112_v20  ;;  %419 = vmatpush3.bf16.msra.mxu1 %v112_v20 }
  0x3b   :  { %369 = vmatprep.subr.bf16.mxu0 %v113_v23  ;;  %412 = vmatprep.subr.bf16.mxu1 %v113_v23  ;;  %p479_p5 = por %p478_p4, %p477_p3 }
  0x3d   :  { %p480_p6 = pnand %p479_p5, %p473_p2 }
  0x3e   :  { %370 = vmatpush3.bf16.msra.mxu0 %v113_v23  ;;  %420 = vmatpush3.bf16.msra.mxu1 %v113_v23 }
  0x3f   :  { %371 = vmatprep.subr.bf16.mxu0 %v114_v26  ;;  %413 = vmatprep.subr.bf16.mxu1 %v114_v26 }
  0x42   :  { %372 = vmatpush3.bf16.msra.mxu0 %v114_v26  ;;  %421 = vmatpush3.bf16.msra.mxu1 %v114_v26 }
  0x43   :  { %373 = vmatprep.subr.bf16.mxu0 %v115_v29  ;;  %414 = vmatprep.subr.bf16.mxu1 %v115_v29 }
  0x46   :  { %374 = vmatpush3.bf16.msra.mxu0 %v115_v29  ;;  %422 = vmatpush3.bf16.msra.mxu1 %v115_v29 }
  0x49   :  { %376 = vmatmul.mubr.bf16.vlgmr.msra.gmra.mrb[0].mxu0 %v77_v38  ;;  %392 = vmatmul.mubr.bf16.vlgmr.msra.gmra.mrb[0].mxu1 %v85_v39 }
  0x4a   :  { %379 = vmatprep.mubr.bf16.mxu0 %v78_v40  ;;  %395 = vmatprep.mubr.bf16.mxu1 %v86_v41 }
  0x51   :  { %380 = vmatmul.mubr.bf16.gmra.mrb[4].mxu0 %v79_v50  ;;  %396 = vmatmul.mubr.bf16.gmra.mrb[4].mxu1 %v87_v51 }
  0x52   :  { %383 = vmatprep.mubr.bf16.mxu0 %v80_v52  ;;  %399 = vmatprep.mubr.bf16.mxu1 %v88_v53 }
  0x59   :  { %384 = vmatmul.mubr.bf16.gmra.mrb[8].mxu0 %v81_v62  ;;  %400 = vmatmul.mubr.bf16.gmra.mrb[8].mxu1 %v89_v63 }
  0x5a   :  { %387 = vmatprep.mubr.bf16.mxu0 %v82_v0  ;;  %403 = vmatprep.mubr.bf16.mxu1 %v90_v1 }
  0x61   :  { %388 = vmatmul.mubr.bf16.gmra.mrb[12].mxu0 %v83_v6  ;;  %404 = vmatmul.mubr.bf16.gmra.mrb[12].mxu1 %v91_v7 }
 0x11c   :  { %v377_v9 = vpop.f32.mrb[0].mxu0  ;;  %v393_v10 = vpop.f32.mrb[0].mxu1 }
 0x11d   :  { %v166_v11 = vadd.f32 %v377_v9, %v558_v8  ;;  %v230_v12 = vadd.f32 %v393_v10, %v558_v8  ;;  %v157_v13 = vpop.f32.mrb[1].mxu0  ;;  %v221_v14 = vpop.f32.mrb[1].mxu1 }
 0x11e   :  { %v158_v15 = vadd.f32 %v558_v8, %v157_v13  ;;  %v222_v16 = vadd.f32 %v558_v8, %v221_v14  ;;  %v378_v17 = vpop.f32.mrb[2].mxu0  ;;  %v394_v18 = vpop.f32.mrb[2].mxu1 }
 0x11f   :  { %286 = vst [vmem:[#allocation7 + $0x10] sm:$0xff] %v166_v11  ;;  %302 = vst [vmem:[#allocation7 + $0x90] sm:$0xff] %v230_v12  ;;  %v169_v19 = vadd.f32 %v378_v17, %v558_v8  ;;  %v233_v20 = vadd.f32 %v394_v18, %v558_v8  ;;  %v160_v21 = vpop.f32.mrb[3].mxu0  ;;  %v224_v22 = vpop.f32.mrb[3].mxu1 }
 0x120   :  { %284 = vst [vmem:[#allocation7] sm:$0xff] %v158_v15  ;;  %300 = vst [vmem:[#allocation7 + $0x80] sm:$0xff] %v222_v16  ;;  %v161_v23 = vadd.f32 %v558_v8, %v160_v21  ;;  %v225_v24 = vadd.f32 %v558_v8, %v224_v22 }
 0x121   :  { %287 = vst [vmem:[#allocation7 + $0x18] sm:$0xff] %v169_v19  ;;  %303 = vst [vmem:[#allocation7 + $0x98] sm:$0xff] %v233_v20 }
 0x122   :  { %285 = vst [vmem:[#allocation7 + $0x8] sm:$0xff] %v161_v23  ;;  %301 = vst [vmem:[#allocation7 + $0x88] sm:$0xff] %v225_v24 }
 0x124   :  { %v381_v25 = vpop.f32.mrb[4].mxu0  ;;  %v397_v26 = vpop.f32.mrb[4].mxu1 }
 0x125   :  { %v182_v27 = vadd.f32 %v381_v25, %v558_v8  ;;  %v246_v28 = vadd.f32 %v397_v26, %v558_v8  ;;  %v173_v29 = vpop.f32.mrb[5].mxu0  ;;  %v237_v30 = vpop.f32.mrb[5].mxu1 }
 0x126   :  { %v174_v31 = vadd.f32 %v558_v8, %v173_v29  ;;  %v238_v32 = vadd.f32 %v558_v8, %v237_v30  ;;  %v382_v33 = vpop.f32.mrb[6].mxu0  ;;  %v398_v34 = vpop.f32.mrb[6].mxu1 }
 0x127   :  { %290 = vst [vmem:[#allocation7 + $0x30] sm:$0xff] %v182_v27  ;;  %306 = vst [vmem:[#allocation7 + $0xb0] sm:$0xff] %v246_v28  ;;  %v185_v35 = vadd.f32 %v382_v33, %v558_v8  ;;  %v249_v36 = vadd.f32 %v398_v34, %v558_v8  ;;  %v176_v37 = vpop.f32.mrb[7].mxu0  ;;  %v240_v38 = vpop.f32.mrb[7].mxu1 }
 0x128   :  { %288 = vst [vmem:[#allocation7 + $0x20] sm:$0xff] %v174_v31  ;;  %304 = vst [vmem:[#allocation7 + $0xa0] sm:$0xff] %v238_v32  ;;  %v177_v39 = vadd.f32 %v558_v8, %v176_v37  ;;  %v241_v40 = vadd.f32 %v558_v8, %v240_v38 }
 0x129   :  { %291 = vst [vmem:[#allocation7 + $0x38] sm:$0xff] %v185_v35  ;;  %307 = vst [vmem:[#allocation7 + $0xb8] sm:$0xff] %v249_v36 }
 0x12a   :  { %289 = vst [vmem:[#allocation7 + $0x28] sm:$0xff] %v177_v39  ;;  %305 = vst [vmem:[#allocation7 + $0xa8] sm:$0xff] %v241_v40 }
 0x12c   :  { %v385_v41 = vpop.f32.mrb[8].mxu0  ;;  %v401_v42 = vpop.f32.mrb[8].mxu1 }
 0x12d   :  { %v198_v43 = vadd.f32 %v385_v41, %v558_v8  ;;  %v262_v44 = vadd.f32 %v401_v42, %v558_v8  ;;  %v189_v45 = vpop.f32.mrb[9].mxu0  ;;  %v253_v46 = vpop.f32.mrb[9].mxu1 }
 0x12e   :  { %v190_v47 = vadd.f32 %v558_v8, %v189_v45  ;;  %v254_v48 = vadd.f32 %v558_v8, %v253_v46  ;;  %v386_v49 = vpop.f32.mrb[10].mxu0  ;;  %v402_v50 = vpop.f32.mrb[10].mxu1 }
 0x12f   :  { %294 = vst [vmem:[#allocation7 + $0x50] sm:$0xff] %v198_v43  ;;  %310 = vst [vmem:[#allocation7 + $0xd0] sm:$0xff] %v262_v44  ;;  %v201_v51 = vadd.f32 %v386_v49, %v558_v8  ;;  %v265_v52 = vadd.f32 %v402_v50, %v558_v8  ;;  %v192_v53 = vpop.f32.mrb[11].mxu0  ;;  %v256_v54 = vpop.f32.mrb[11].mxu1 }
 0x130   :  { %292 = vst [vmem:[#allocation7 + $0x40] sm:$0xff] %v190_v47  ;;  %308 = vst [vmem:[#allocation7 + $0xc0] sm:$0xff] %v254_v48  ;;  %v193_v55 = vadd.f32 %v558_v8, %v192_v53  ;;  %v257_v56 = vadd.f32 %v558_v8, %v256_v54 }
 0x131   :  { %295 = vst [vmem:[#allocation7 + $0x58] sm:$0xff] %v201_v51  ;;  %311 = vst [vmem:[#allocation7 + $0xd8] sm:$0xff] %v265_v52 }
 0x132   :  { %293 = vst [vmem:[#allocation7 + $0x48] sm:$0xff] %v193_v55  ;;  %309 = vst [vmem:[#allocation7 + $0xc8] sm:$0xff] %v257_v56 }
 0x134   :  { %v389_v57 = vpop.f32.mrb[12].mxu0  ;;  %v405_v58 = vpop.f32.mrb[12].mxu1 }
 0x135   :  { %v214_v59 = vadd.f32 %v389_v57, %v558_v8  ;;  %v278_v60 = vadd.f32 %v405_v58, %v558_v8  ;;  %v205_v61 = vpop.f32.mrb[13].mxu0  ;;  %v269_v62 = vpop.f32.mrb[13].mxu1 }
 0x136   :  { %v206_v63 = vadd.f32 %v558_v8, %v205_v61  ;;  %v270_v0 = vadd.f32 %v558_v8, %v269_v62  ;;  %v390_v1 = vpop.f32.mrb[14].mxu0  ;;  %v406_v2 = vpop.f32.mrb[14].mxu1 }
 0x137   :  { %298 = vst [vmem:[#allocation7 + $0x70] sm:$0xff] %v214_v59  ;;  %314 = vst [vmem:[#allocation7 + $0xf0] sm:$0xff] %v278_v60  ;;  %v217_v3 = vadd.f32 %v390_v1, %v558_v8  ;;  %v281_v4 = vadd.f32 %v406_v2, %v558_v8  ;;  %v208_v5 = vpop.f32.mrb[15].mxu0  ;;  %v272_v6 = vpop.f32.mrb[15].mxu1 }
 0x138   :  { %296 = vst [vmem:[#allocation7 + $0x60] sm:$0xff] %v206_v63  ;;  %312 = vst [vmem:[#allocation7 + $0xe0] sm:$0xff] %v270_v0  ;;  %v209_v7 = vadd.f32 %v558_v8, %v208_v5  ;;  %v273_v9 = vadd.f32 %v558_v8, %v272_v6 }
 0x139   :  { %299 = vst [vmem:[#allocation7 + $0x78] sm:$0xff] %v217_v3  ;;  %315 = vst [vmem:[#allocation7 + $0xf8] sm:$0xff] %v281_v4 }
 0x13a   :  { %297 = vst [vmem:[#allocation7 + $0x68] sm:$0xff] %v209_v7  ;;  %313 = vst [vmem:[#allocation7 + $0xe8] sm:$0xff] %v273_v9 }
 0x13b   :  { %483 = shalt.err (!%p480_p6)
}
 0x13c   :  { %s484_s15 = scalar_lea.hbm %s610_s3, 4096 }
 0x13d   :  { %p485_p7 = scmp.ne.s32.totalorder %s610_s3, %s484_s15  ;;  %p488_p8 = scmp.lt.u32.totalorder %s484_s15, %s610_s3 }
 0x13f   :  { %p490_p9 = pnand %p488_p8, %p485_p7 }
 0x141   :  { %493 = shalt.err (!%p490_p9)
}
 0x142   :  { %327 = dma.vmem_to_hbm [thread:$0]  %s322_s11, 4096, %s610_s3, [#allocation4], %s501_s22, %s501_s22, %s502_s23  }
 0x143   :  { %498 = dma.done.wait [#allocation4], 4096  }
 0x144   :  { %499 = vsyncadd [#allocation4], 4294963200 }
 0x145   :  { %331 = vsyncpa [#allocation3], 1 }
 0x146   :  { %332 = vsyncpa [#allocation6], 1 }
 0x147   :  { %333 = vsyncpa [#allocation4], 1 }

</bundles_post_ra>
